<compile_context>
chip_gen: v6e
topology: v6e:2x2x1
jax: 0.10.0
libtpu: 0.0.40
codegen_flags: <defaults>
</compile_context>

<pallas_src>
import jax
import jax.numpy as jnp
from jax.experimental import pallas as pl
from jax.experimental.pallas import tpu as pltpu

D_IN = 768       # BERT pooled_output hidden size
D_H1 = 256       # first classifier hidden
D_H2 = 64        # second classifier hidden
D_OUT = 2        # logits
D_H2_PAD = 128   # lane-dense padding of the 64-wide hidden
D_OUT_PAD = 128  # lane-dense padding of the 2-wide logits
BIAS_LANES = D_H1 + D_H2_PAD + D_OUT_PAD  # 512


def _round_up(a, m):
    return (a + m - 1) // m * m


def cls_mlp_kernel(x_ref, w1_ref, w2_ref, w3_ref, bias_ref, o_ref):
    """x_ref: (TB, 768) bf16; weights bf16 (BN pre-folded, zero-padded);
    bias_ref: (1, 512) f32 packed [b1 | b2_pad | b3_pad]; o_ref: (TB, 128) f32."""
    b1 = bias_ref[:, 0:D_H1]                         # (1, 256) f32
    b2 = bias_ref[:, D_H1:D_H1 + D_H2_PAD]           # (1, 128) f32
    b3 = bias_ref[:, D_H1 + D_H2_PAD:BIAS_LANES]     # (1, 128) f32

    # Linear(768 -> 256) + ReLU   (bf16 MXU, f32 accumulate, f32 elementwise)
    h1 = jnp.dot(x_ref[...], w1_ref[...], preferred_element_type=jnp.float32)
    h1 = jnp.maximum(h1 + b1, 0.0)

    # [BN1 folded] Linear(256 -> 64, padded to 128) + ReLU
    h2 = jnp.dot(h1.astype(jnp.bfloat16), w2_ref[...],
                 preferred_element_type=jnp.float32)
    h2 = jnp.maximum(h2 + b2, 0.0)

    # [BN2 folded] Linear(64 -> 2, padded to 128x128)
    out = jnp.dot(h2.astype(jnp.bfloat16), w3_ref[...],
                  preferred_element_type=jnp.float32)
    o_ref[...] = out + b3


def bert_cls_mlp(x, fused_params):
    """x: (B, 768) f32 pooled_output. Returns (B, 2) f32 logits."""
    w1, w2, w3, bias = fused_params
    B = x.shape[0]

    # Batch tile: modest size, bf16-sublane friendly (multiple of 16).
    TB = min(256, _round_up(B, 16))
    B_pad = _round_up(B, TB)
    if B_pad != B:
        x = jnp.pad(x, ((0, B_pad - B), (0, 0)))
    x_bf = x.astype(jnp.bfloat16)

    out = pl.pallas_call(
        cls_mlp_kernel,
        out_shape=jax.ShapeDtypeStruct((B_pad, D_OUT_PAD), jnp.float32),
        grid=(B_pad // TB,),
        in_specs=[
            pl.BlockSpec((TB, D_IN), lambda i: (i, 0)),        # x tile (pipelined)
            pl.BlockSpec((D_IN, D_H1), lambda i: (0, 0)),      # w1 (resident)
            pl.BlockSpec((D_H1, D_H2_PAD), lambda i: (0, 0)),  # w2 (BN1 folded)
            pl.BlockSpec((D_H2_PAD, D_OUT_PAD), lambda i: (0, 0)),  # w3 (BN2 folded)
            pl.BlockSpec((1, BIAS_LANES), lambda i: (0, 0)),   # packed biases
        ],
        out_specs=pl.BlockSpec((TB, D_OUT_PAD), lambda i: (i, 0)),
        compiler_params=pltpu.CompilerParams(
            dimension_semantics=("parallel",)),
    )(x_bf, w1, w2, w3, bias)

    return out[:B, :D_OUT]


def init_raw_params(key):
    """Deterministic synthetic parameters matching the classifier shapes.
    Linear weights stored transposed as (in, out)."""
    ks = jax.random.split(key, 16)
    f32 = jnp.float32

    w1 = jax.random.normal(ks[0], (D_IN, D_H1), f32) * 0.02
    b1 = jax.random.normal(ks[1], (1, D_H1), f32) * 0.01
    w2 = jax.random.normal(ks[2], (D_H1, D_H2), f32) * 0.05
    b2 = jax.random.normal(ks[3], (1, D_H2), f32) * 0.01
    w3 = jax.random.normal(ks[4], (D_H2, D_OUT), f32) * 0.1
    b3 = jax.random.normal(ks[5], (1, D_OUT), f32) * 0.01

    # BatchNorm1d(256): gamma, beta, running_mean, running_var
    g1 = 1.0 + 0.1 * jax.random.normal(ks[6], (1, D_H1), f32)
    be1 = 0.1 * jax.random.normal(ks[7], (1, D_H1), f32)
    rm1 = 0.1 * jax.random.normal(ks[8], (1, D_H1), f32)
    rv1 = 1.0 + 0.1 * jax.random.uniform(ks[9], (1, D_H1), f32)

    # BatchNorm1d(64)
    g2 = 1.0 + 0.1 * jax.random.normal(ks[10], (1, D_H2), f32)
    be2 = 0.1 * jax.random.normal(ks[11], (1, D_H2), f32)
    rm2 = 0.1 * jax.random.normal(ks[12], (1, D_H2), f32)
    rv2 = 1.0 + 0.1 * jax.random.uniform(ks[13], (1, D_H2), f32)

    return (w1, b1, g1, be1, rm1, rv1,
            w2, b2, g2, be2, rm2, rv2,
            w3, b3)


def fuse_params(raw):
    """Fold eval-mode BN into the following Linear, zero-pad to lane-dense
    shapes, pack biases, and cast weights to bf16."""
    (w1, b1, g1, be1, rm1, rv1,
     w2, b2, g2, be2, rm2, rv2,
     w3, b3) = raw
    eps = 1e-5

    s1 = g1 / jnp.sqrt(rv1 + eps)        # (1, 256)
    t1 = be1 - rm1 * s1
    s2 = g2 / jnp.sqrt(rv2 + eps)        # (1, 64)
    t2 = be2 - rm2 * s2

    # (h*s1 + t1) @ w2 + b2 == h @ (s1.T * w2) + (t1 @ w2 + b2)
    w2f = w2 * s1.T                      # (256, 64)
    b2f = t1 @ w2 + b2                   # (1, 64)
    w3f = w3 * s2.T                      # (64, 2)
    b3f = t2 @ w3 + b3                   # (1, 2)

    # Zero-pad to lane-dense 128-wide shapes (padded lanes stay exactly zero:
    # zero bias -> relu(0)=0 -> zero rows of w3 -> zero logits columns).
    w2p = jnp.pad(w2f, ((0, 0), (0, D_H2_PAD - D_H2)))                    # (256,128)
    b2p = jnp.pad(b2f, ((0, 0), (0, D_H2_PAD - D_H2)))                    # (1,128)
    w3p = jnp.pad(w3f, ((0, D_H2_PAD - D_H2), (0, D_OUT_PAD - D_OUT)))    # (128,128)
    b3p = jnp.pad(b3f, ((0, 0), (0, D_OUT_PAD - D_OUT)))                  # (1,128)

    bias_packed = jnp.concatenate([b1, b2p, b3p], axis=1).astype(jnp.float32)
    return (w1.astype(jnp.bfloat16),
            w2p.astype(jnp.bfloat16),
            w3p.astype(jnp.bfloat16),
            bias_packed)


def reference_f32(x, raw):
    """Plain-JAX f32 reference of the original (unfused) classifier head."""
    (w1, b1, g1, be1, rm1, rv1,
     w2, b2, g2, be2, rm2, rv2,
     w3, b3) = raw
    eps = 1e-5
    s1 = g1 / jnp.sqrt(rv1 + eps)
    t1 = be1 - rm1 * s1
    s2 = g2 / jnp.sqrt(rv2 + eps)
    t2 = be2 - rm2 * s2
    h1 = jnp.maximum(x @ w1 + b1, 0.0) * s1 + t1
    h2 = jnp.maximum(h1 @ w2 + b2, 0.0) * s2 + t2
    return h2 @ w3 + b3


def reference_matched(x, fused_params):
    """Plain-JAX reference that mirrors the kernel's bf16/f32 precision path."""
    w1, w2, w3, bias = fused_params
    b1 = bias[:, 0:D_H1]
    b2 = bias[:, D_H1:D_H1 + D_H2_PAD]
    b3 = bias[:, D_H1 + D_H2_PAD:BIAS_LANES]
    xb = x.astype(jnp.bfloat16)
    h1 = jnp.maximum(
        jnp.dot(xb, w1, preferred_element_type=jnp.float32) + b1, 0.0)
    h2 = jnp.maximum(
        jnp.dot(h1.astype(jnp.bfloat16), w2,
                preferred_element_type=jnp.float32) + b2, 0.0)
    out = jnp.dot(h2.astype(jnp.bfloat16), w3,
                  preferred_element_type=jnp.float32) + b3
    return out[:, :D_OUT]


if __name__ == "__main__":
    key = jax.random.PRNGKey(0)
    k_x, k_p = jax.random.split(key)

    B = 8
    # Synthetic pooled_output from the (untranslated) BERT backbone.
    x = jax.random.normal(k_x, (B, D_IN), jnp.float32)
    raw = init_raw_params(k_p)
    fused = fuse_params(raw)

    logits = bert_cls_mlp(x, fused)
    logits = jax.block_until_ready(logits)
    assert logits.shape == (B, D_OUT)

    # Same-precision (bf16 weights, f32 accumulate) reference: should match tightly.
    ref_m = reference_matched(x, fused)
    assert jnp.allclose(logits, ref_m, atol=1e-3, rtol=1e-3), \
        "mismatch vs same-precision reference"

    # Full-f32 unfused reference: matches up to bf16 weight rounding.
    ref_f = reference_f32(x, raw)
    assert jnp.allclose(logits, ref_f, atol=5e-2, rtol=5e-2), \
        "mismatch vs f32 reference"

    print("KERNEL_OK")
</pallas_src>

<mosaic_0001>
module attributes {stable_mosaic.version = 11 : i64} {
  func.func @cls_mlp_kernel(%arg0: i32, %arg1: memref<16x768xbf16, #tpu.memory_space<vmem>>, %arg2: memref<768x256xbf16, #tpu.memory_space<vmem>>, %arg3: memref<256x128xbf16, #tpu.memory_space<vmem>>, %arg4: memref<128x128xbf16, #tpu.memory_space<vmem>>, %arg5: memref<1x512xf32, #tpu.memory_space<vmem>>, %arg6: memref<16x128xf32, #tpu.memory_space<vmem>>) attributes {dimension_semantics = [#tpu.dimension_semantics<parallel>], iteration_bounds = array<i64: 1>, scalar_prefetch = 0 : i64, scratch_operands = 0 : i64, tpu.core_type = #tpu.core_type<tc>, window_params = [{transform_indices = @transform_0, window_bounds = array<i64: 16, 768>}, {pipeline_mode = #tpu.pipeline_mode<synchronous>, transform_indices = @transform_1, window_bounds = array<i64: 768, 256>}, {pipeline_mode = #tpu.pipeline_mode<synchronous>, transform_indices = @transform_2, window_bounds = array<i64: 256, 128>}, {pipeline_mode = #tpu.pipeline_mode<synchronous>, transform_indices = @transform_3, window_bounds = array<i64: 128, 128>}, {pipeline_mode = #tpu.pipeline_mode<synchronous>, transform_indices = @transform_4, window_bounds = array<i64: 1, 512>}, {transform_indices = @transform_5, window_bounds = array<i64: 16, 128>}]} {
    %c0 = arith.constant 0 : index
    %c0_0 = arith.constant 0 : index
    %0 = vector.load %arg5[%c0, %c0_0] : memref<1x512xf32, #tpu.memory_space<vmem>>, vector<1x256xf32>
    %c0_1 = arith.constant 0 : index
    %c256 = arith.constant 256 : index
    %1 = vector.load %arg5[%c0_1, %c256] : memref<1x512xf32, #tpu.memory_space<vmem>>, vector<1x128xf32>
    %c0_2 = arith.constant 0 : index
    %c384 = arith.constant 384 : index
    %2 = vector.load %arg5[%c0_2, %c384] : memref<1x512xf32, #tpu.memory_space<vmem>>, vector<1x128xf32>
    %c0_3 = arith.constant 0 : index
    %c0_4 = arith.constant 0 : index
    %3 = vector.load %arg1[%c0_3, %c0_4] : memref<16x768xbf16, #tpu.memory_space<vmem>>, vector<16x768xbf16>
    %c0_5 = arith.constant 0 : index
    %c0_6 = arith.constant 0 : index
    %4 = vector.load %arg2[%c0_5, %c0_6] : memref<768x256xbf16, #tpu.memory_space<vmem>>, vector<768x256xbf16>
    %cst = arith.constant dense<0.000000e+00> : vector<16x256xf32>
    %5 = tpu.matmul %3, %4, %cst {dimension_numbers = #tpu.dot_dimension_numbers<[1], [0], [0], [1], [0, 0, 1, 1], [], []>} : vector<16x768xbf16>, vector<768x256xbf16>, vector<16x256xf32> -> vector<16x256xf32>
    %6 = vector.broadcast %0 : vector<1x256xf32> to vector<16x256xf32>
    %7 = arith.addf %5, %6 : vector<16x256xf32>
    %cst_7 = arith.constant 0.000000e+00 : f32
    %8 = vector.broadcast %cst_7 : f32 to vector<16x256xf32>
    %9 = arith.maximumf %7, %8 : vector<16x256xf32>
    %10 = arith.truncf %9 : vector<16x256xf32> to vector<16x256xbf16>
    %c0_8 = arith.constant 0 : index
    %c0_9 = arith.constant 0 : index
    %11 = vector.load %arg3[%c0_8, %c0_9] : memref<256x128xbf16, #tpu.memory_space<vmem>>, vector<256x128xbf16>
    %cst_10 = arith.constant dense<0.000000e+00> : vector<16x128xf32>
    %12 = tpu.matmul %10, %11, %cst_10 {dimension_numbers = #tpu.dot_dimension_numbers<[1], [0], [0], [1], [0, 0, 1, 1], [], []>} : vector<16x256xbf16>, vector<256x128xbf16>, vector<16x128xf32> -> vector<16x128xf32>
    %13 = vector.broadcast %1 : vector<1x128xf32> to vector<16x128xf32>
    %14 = arith.addf %12, %13 : vector<16x128xf32>
    %cst_11 = arith.constant 0.000000e+00 : f32
    %15 = vector.broadcast %cst_11 : f32 to vector<16x128xf32>
    %16 = arith.maximumf %14, %15 : vector<16x128xf32>
    %17 = arith.truncf %16 : vector<16x128xf32> to vector<16x128xbf16>
    %c0_12 = arith.constant 0 : index
    %c0_13 = arith.constant 0 : index
    %18 = vector.load %arg4[%c0_12, %c0_13] : memref<128x128xbf16, #tpu.memory_space<vmem>>, vector<128x128xbf16>
    %cst_14 = arith.constant dense<0.000000e+00> : vector<16x128xf32>
    %19 = tpu.matmul %17, %18, %cst_14 {dimension_numbers = #tpu.dot_dimension_numbers<[1], [0], [0], [1], [0, 0, 1, 1], [], []>} : vector<16x128xbf16>, vector<128x128xbf16>, vector<16x128xf32> -> vector<16x128xf32>
    %20 = vector.broadcast %2 : vector<1x128xf32> to vector<16x128xf32>
    %21 = arith.addf %19, %20 : vector<16x128xf32>
    %c0_15 = arith.constant 0 : index
    %c0_16 = arith.constant 0 : index
    %22 = vector.load %arg6[%c0_15, %c0_16] : memref<16x128xf32, #tpu.memory_space<vmem>>, vector<16x128xf32>
    tpu.vector_store %arg6[%c0_15, %c0_16], %21 {strides = array<i32>} : memref<16x128xf32, #tpu.memory_space<vmem>>, vector<16x128xf32>,
    return
  }
  func.func @transform_0(%arg0: i32) -> (i32, i32) {
    %c0_i32 = arith.constant 0 : i32
    %c0_i32_0 = arith.constant 0 : i32
    return %arg0, %c0_i32 : i32, i32
  }
  func.func @transform_1(%arg0: i32) -> (i32, i32) {
    %c0_i32 = arith.constant 0 : i32
    %c0_i32_0 = arith.constant 0 : i32
    %c0_i32_1 = arith.constant 0 : i32
    return %c0_i32, %c0_i32_0 : i32, i32
  }
  func.func @transform_2(%arg0: i32) -> (i32, i32) {
    %c0_i32 = arith.constant 0 : i32
    %c0_i32_0 = arith.constant 0 : i32
    %c0_i32_1 = arith.constant 0 : i32
    return %c0_i32, %c0_i32_0 : i32, i32
  }
  func.func @transform_3(%arg0: i32) -> (i32, i32) {
    %c0_i32 = arith.constant 0 : i32
    %c0_i32_0 = arith.constant 0 : i32
    %c0_i32_1 = arith.constant 0 : i32
    return %c0_i32, %c0_i32_0 : i32, i32
  }
  func.func @transform_4(%arg0: i32) -> (i32, i32) {
    %c0_i32 = arith.constant 0 : i32
    %c0_i32_0 = arith.constant 0 : i32
    %c0_i32_1 = arith.constant 0 : i32
    return %c0_i32, %c0_i32_0 : i32, i32
  }
  func.func @transform_5(%arg0: i32) -> (i32, i32) {
    %c0_i32 = arith.constant 0 : i32
    %c0_i32_0 = arith.constant 0 : i32
    return %arg0, %c0_i32 : i32, i32
  }
}

</mosaic_0001>

<bundles_post_ra>
// kernel: tpu_custom_call.1
= control target key start
LH: loop header
LB: loop body
LE: loop exit
PB: predicated region body
PF: predicated region fallthrough
CT: control target
= control target key end

     0   :  { %10 = vsyncpa [#allocation3], 0  ;;  %s1707_s0 = inlined_call_operand.hbm [shape: bf16[16,768], index: 0, kind: input, shape index: {}]   ;;  %s1708_s1 = inlined_call_operand.hbm [shape: bf16[768,256], index: 1, kind: input, shape index: {}]   ;;  %s1709_s2 = inlined_call_operand.hbm [shape: bf16[256,128], index: 2, kind: input, shape index: {}]   ;;  %s1710_s3 = inlined_call_operand.hbm [shape: bf16[128,128], index: 3, kind: input, shape index: {}]   ;;  %s1711_s4 = inlined_call_operand.vmem [shape: f32[1,512], index: 4, kind: input, shape index: {}]   ;;  %s1712_s5 = inlined_call_operand.hbm [shape: f32[16,128], index: 5, kind: output, shape index: {}]  }
   0x1   :  { %11 = vsyncpa [#allocation6], 0 }
   0x2   :  { %12 = vsyncpa [#allocation9], 0 }
   0x3   :  { %13 = vsyncpa [#allocation4], 0  ;;  %s1625_s18 = smov [#allocation5]  }
   0x4   :  { %s31_s19 = sshll.u32 %s1625_s18, 4  ;;  %s32_s19 = int_to_ptr.vmem [resolvable:$true] %s31_s19 }
   0x5   :  { %s1525_s20 = scalar_lea.vmem %s32_s19, 12288  ;;  %p1530_p1 = scmp.lt.s32.totalorder %s32_s19, %s32_s19 }
   0x6   :  { %p1526_p0 = scmp.ne.s32.totalorder %s32_s19, %s1525_s20  ;;  %p1531_p2 = scmp.lt.s32.totalorder %s1525_s20, %s1525_s20 }
   0x8   :  { %p1532_p3 = por %p1531_p2, %p1530_p1 }
   0xa   :  { %p1533_p4 = pnand %p1532_p3, %p1526_p0 }
   0xc   :  { %1536 = shalt.err (!%p1533_p4)
}
   0xd   :  { %s1626_s21 = smov 128   ;;  %s1627_s22 = smov 8  }
   0xe   :  { %37 = dma.hbm_to_vmem [thread:$0]  %s1708_s1, 12288, %s32_s19, [#allocation6], %s1626_s21, %s1626_s21, %s1627_s22  }
   0xf   :  { %s1628_s25 = smov [#allocation2]  }
  0x10   :  { %s19_s26 = sshll.u32 %s1628_s25, 4  ;;  %s20_s26 = int_to_ptr.vmem [resolvable:$true] %s19_s26 }
  0x11   :  { %s1545_s27 = scalar_lea.vmem %s20_s26, 768  ;;  %p1550_p6 = scmp.lt.s32.totalorder %s20_s26, %s20_s26 }
  0x12   :  { %p1546_p5 = scmp.ne.s32.totalorder %s20_s26, %s1545_s27  ;;  %p1551_p7 = scmp.lt.s32.totalorder %s1545_s27, %s1545_s27 }
  0x14   :  { %p1552_p8 = por %p1551_p7, %p1550_p6 }
  0x16   :  { %p1553_p9 = pnand %p1552_p8, %p1546_p5 }
  0x18   :  { %1556 = shalt.err (!%p1553_p9)
}
  0x19   :  { %s1629_s28 = smov 384   ;;  %s1630_s29 = smov 24  }
  0x1a   :  { %25 = dma.hbm_to_vmem [thread:$0]  %s1707_s0, 768, %s20_s26, [#allocation3], %s1629_s28, %s1629_s28, %s1630_s29  }
  0x1b   :  { %s1631_s7 = smov [#allocation7]  }
  0x1c   :  { %s43_s8 = sshll.u32 %s1631_s7, 4  ;;  %s44_s8 = int_to_ptr.vmem [resolvable:$true] %s43_s8 }
  0x1d   :  { %s1565_s1 = scalar_lea.vmem %s44_s8, 2048  ;;  %p1570_p11 = scmp.lt.s32.totalorder %s44_s8, %s44_s8 }
  0x1e   :  { %p1566_p10 = scmp.ne.s32.totalorder %s44_s8, %s1565_s1  ;;  %p1571_p12 = scmp.lt.s32.totalorder %s1565_s1, %s1565_s1 }
  0x20   :  { %p1572_p13 = por %p1571_p12, %p1570_p11 }
  0x22   :  { %p1573_p0 = pnand %p1572_p13, %p1566_p10 }
  0x24   :  { %1576 = shalt.err (!%p1573_p0)
}
  0x25   :  { %s1632_s9 = smov 64   ;;  %s1633_s10 = smov 4  }
  0x26   :  { %49 = dma.hbm_to_vmem [thread:$0]  %s1709_s2, 2048, %s44_s8, [#allocation6], %s1632_s9, %s1632_s9, %s1633_s10  }
  0x27   :  { %s1634_s13 = smov [#allocation8]  }
  0x28   :  { %s55_s14 = sshll.u32 %s1634_s13, 4  ;;  %s56_s14 = int_to_ptr.vmem [resolvable:$true] %s55_s14 }
  0x29   :  { %s1585_s0 = scalar_lea.vmem %s56_s14, 1024  ;;  %p1590_p2 = scmp.lt.s32.totalorder %s56_s14, %s56_s14 }
  0x2a   :  { %p1586_p1 = scmp.ne.s32.totalorder %s56_s14, %s1585_s0  ;;  %p1591_p3 = scmp.lt.s32.totalorder %s1585_s0, %s1585_s0 }
  0x2c   :  { %p1592_p4 = por %p1591_p3, %p1590_p2 }
  0x2e   :  { %p1593_p5 = pnand %p1592_p4, %p1586_p1 }
  0x30   :  { %1596 = shalt.err (!%p1593_p5)
}
  0x31   :  { %61 = dma.hbm_to_vmem [thread:$0]  %s1710_s3, 1024, %s56_s14, [#allocation9], %s1632_s9, %s1632_s9, %s1633_s10  }
  0x32   :  { %1617 = dma.done.wait [#allocation3], 768  }
  0x33   :  { %1618 = vsyncadd [#allocation3], 4294966528 }
  0x34   :  { %1619 = dma.done.wait [#allocation6], 14336  }
  0x35   :  { %1620 = vsyncadd [#allocation6], 4294952960 }
  0x36   :  { %1621 = dma.done.wait [#allocation9], 1024  }
  0x37   :  { %1622 = vsyncadd [#allocation9], 4294966272  ;;  %v1340_v0 = vld [vmem:[#allocation5 + $0x74] ss:$8 sps:$4 sm:$0xff]   ;;  %v1342_v1 = vld [vmem:[#allocation5 + $0x70] ss:$8 sps:$4 sm:$0xff]  }
  0x38   :  { %703 = vmatprep.subr.bf16.mxu0 %v1340_v0  ;;  %v1343_v2 = vld [vmem:[#allocation5 + $0x174] ss:$8 sps:$4 sm:$0xff]   ;;  %v1345_v3 = vld [vmem:[#allocation5 + $0x170] ss:$8 sps:$4 sm:$0xff]   ;;  %v1346_v4 = vld [vmem:[#allocation5 + $0x64] ss:$8 sps:$4 sm:$0xff]  }
  0x39   :  { %704 = vmatpush1.bf16.msra.mxu0 %v1342_v1  ;;  %v1348_v5 = vld [vmem:[#allocation5 + $0x60] ss:$8 sps:$4 sm:$0xff]   ;;  %746 = vmatprep.subr.bf16.mxu1 %v1343_v2  ;;  %v1349_v6 = vld [vmem:[#allocation5 + $0x164] ss:$8 sps:$4 sm:$0xff]   ;;  %v1352_v8 = vld [vmem:[#allocation5 + $0x54] ss:$8 sps:$4 sm:$0xff]  }
  0x3a   :  { %747 = vmatpush1.bf16.msra.mxu1 %v1345_v3  ;;  %705 = vmatprep.subr.bf16.mxu0 %v1346_v4  ;;  %v1351_v7 = vld [vmem:[#allocation5 + $0x160] ss:$8 sps:$4 sm:$0xff]   ;;  %v1354_v9 = vld [vmem:[#allocation5 + $0x50] ss:$8 sps:$4 sm:$0xff]   ;;  %v1355_v10 = vld [vmem:[#allocation5 + $0x154] ss:$8 sps:$4 sm:$0xff]  }
  0x3b   :  { %748 = vmatprep.subr.bf16.mxu1 %v1349_v6  ;;  %v1358_v11 = vld [vmem:[#allocation5 + $0x44] ss:$8 sps:$4 sm:$0xff]   ;;  %v1357_v12 = vld [vmem:[#allocation5 + $0x150] ss:$8 sps:$4 sm:$0xff]   ;;  %v1360_v14 = vld [vmem:[#allocation5 + $0x40] ss:$8 sps:$4 sm:$0xff]  }
  0x3c   :  { %v1361_v13 = vld [vmem:[#allocation5 + $0x144] ss:$8 sps:$4 sm:$0xff]   ;;  %v1364_v15 = vld [vmem:[#allocation5 + $0x34] ss:$8 sps:$4 sm:$0xff]   ;;  %v1363_v16 = vld [vmem:[#allocation5 + $0x140] ss:$8 sps:$4 sm:$0xff]  }
  0x3d   :  { %706 = vmatpush1.bf16.msra.mxu0 %v1348_v5  ;;  %v1367_v17 = vld [vmem:[#allocation5 + $0x134] ss:$8 sps:$4 sm:$0xff]   ;;  %v1366_v18 = vld [vmem:[#allocation5 + $0x30] ss:$8 sps:$4 sm:$0xff]   ;;  %v1370_v19 = vld [vmem:[#allocation5 + $0x24] ss:$8 sps:$4 sm:$0xff]  }
  0x3e   :  { %707 = vmatprep.subr.bf16.mxu0 %v1352_v8  ;;  %749 = vmatpush1.bf16.msra.mxu1 %v1351_v7  ;;  %v1369_v20 = vld [vmem:[#allocation5 + $0x130] ss:$8 sps:$4 sm:$0xff]   ;;  %v1373_v21 = vld [vmem:[#allocation5 + $0x124] ss:$8 sps:$4 sm:$0xff]   ;;  %v1372_v22 = vld [vmem:[#allocation5 + $0x20] ss:$8 sps:$4 sm:$0xff]  }
  0x3f   :  { %750 = vmatprep.subr.bf16.mxu1 %v1355_v10  ;;  %v1376_v23 = vld [vmem:[#allocation5 + $0x14] ss:$8 sps:$4 sm:$0xff]   ;;  %v1375_v24 = vld [vmem:[#allocation5 + $0x120] ss:$8 sps:$4 sm:$0xff]   ;;  %v1378_v26 = vld [vmem:[#allocation5 + $0x10] ss:$8 sps:$4 sm:$0xff]  }
  0x40   :  { %v1379_v25 = vld [vmem:[#allocation5 + $0x114] ss:$8 sps:$4 sm:$0xff]   ;;  %v1382_v27 = vld [vmem:[#allocation5 + $0x4] ss:$8 sps:$4 sm:$0xff]   ;;  %v1381_v28 = vld [vmem:[#allocation5 + $0x110] ss:$8 sps:$4 sm:$0xff]  }
  0x41   :  { %708 = vmatpush1.bf16.msra.mxu0 %v1354_v9  ;;  %v1385_v29 = vld [vmem:[#allocation5 + $0x104] ss:$8 sps:$4 sm:$0xff]   ;;  %v1384_v30 = vld [vmem:[#allocation5] ss:$8 sps:$4 sm:$0xff]   ;;  %v1388_v31 = vld [vmem:[#allocation5 + $0xf4] ss:$8 sps:$4 sm:$0xff]  }
  0x42   :  { %709 = vmatprep.subr.bf16.mxu0 %v1358_v11  ;;  %751 = vmatpush1.bf16.msra.mxu1 %v1357_v12  ;;  %v1387_v32 = vld [vmem:[#allocation5 + $0x100] ss:$8 sps:$4 sm:$0xff]   ;;  %v1391_v33 = vld [vmem:[#allocation5 + $0x1f4] ss:$8 sps:$4 sm:$0xff]   ;;  %v1390_v34 = vld [vmem:[#allocation5 + $0xf0] ss:$8 sps:$4 sm:$0xff]  }
  0x43   :  { %752 = vmatprep.subr.bf16.mxu1 %v1361_v13  ;;  %v1394_v35 = vld [vmem:[#allocation5 + $0xe4] ss:$8 sps:$4 sm:$0xff]   ;;  %v1393_v36 = vld [vmem:[#allocation5 + $0x1f0] ss:$8 sps:$4 sm:$0xff]   ;;  %v1396_v38 = vld [vmem:[#allocation5 + $0xe0] ss:$8 sps:$4 sm:$0xff]  }
  0x44   :  { %v1397_v37 = vld [vmem:[#allocation5 + $0x1e4] ss:$8 sps:$4 sm:$0xff]   ;;  %v1400_v39 = vld [vmem:[#allocation5 + $0xd4] ss:$8 sps:$4 sm:$0xff]   ;;  %v1399_v40 = vld [vmem:[#allocation5 + $0x1e0] ss:$8 sps:$4 sm:$0xff]  }
  0x45   :  { %710 = vmatpush1.bf16.msra.mxu0 %v1360_v14  ;;  %v1403_v41 = vld [vmem:[#allocation5 + $0x1d4] ss:$8 sps:$4 sm:$0xff]   ;;  %v1402_v42 = vld [vmem:[#allocation5 + $0xd0] ss:$8 sps:$4 sm:$0xff]   ;;  %v1406_v43 = vld [vmem:[#allocation5 + $0xc4] ss:$8 sps:$4 sm:$0xff]  }
  0x46   :  { %711 = vmatprep.subr.bf16.mxu0 %v1364_v15  ;;  %753 = vmatpush1.bf16.msra.mxu1 %v1363_v16  ;;  %v1405_v44 = vld [vmem:[#allocation5 + $0x1d0] ss:$8 sps:$4 sm:$0xff]   ;;  %v1409_v45 = vld [vmem:[#allocation5 + $0x1c4] ss:$8 sps:$4 sm:$0xff]   ;;  %v1408_v46 = vld [vmem:[#allocation5 + $0xc0] ss:$8 sps:$4 sm:$0xff]  }
  0x47   :  { %754 = vmatprep.subr.bf16.mxu1 %v1367_v17  ;;  %v1437_v47 = vld [vmem:[#allocation2 + $0x4] ss:$24 sps:$4 sm:$0xff]   ;;  %v1411_v49 = vld [vmem:[#allocation5 + $0x1c0] ss:$8 sps:$4 sm:$0xff]   ;;  %v1414_v52 = vld [vmem:[#allocation5 + $0xb0] ss:$8 sps:$4 sm:$0xff]  }
  0x48   :  { %v1412_v48 = vld [vmem:[#allocation5 + $0xb4] ss:$8 sps:$4 sm:$0xff]   ;;  %735 = vmatprep.mubr.bf16.mxu0 %v1437_v47  ;;  %v1418_v53 = vld [vmem:[#allocation5 + $0xa4] ss:$8 sps:$4 sm:$0xff]   ;;  %v1417_v54 = vld [vmem:[#allocation5 + $0x1b0] ss:$8 sps:$4 sm:$0xff]  }
  0x49   :  { %712 = vmatpush1.bf16.msra.mxu0 %v1366_v18  ;;  %v1415_v50 = vld [vmem:[#allocation5 + $0x1b4] ss:$8 sps:$4 sm:$0xff]   ;;  %v1421_v55 = vld [vmem:[#allocation5 + $0x1a4] ss:$8 sps:$4 sm:$0xff]   ;;  %v1420_v56 = vld [vmem:[#allocation5 + $0xa0] ss:$8 sps:$4 sm:$0xff]  }
  0x4a   :  { %713 = vmatprep.subr.bf16.mxu0 %v1370_v19  ;;  %755 = vmatpush1.bf16.msra.mxu1 %v1369_v20  ;;  %v1444_v51 = vld [vmem:[#allocation2 + $0xc] ss:$24 sps:$4 sm:$0xff]   ;;  %v1423_v58 = vld [vmem:[#allocation5 + $0x1a0] ss:$8 sps:$4 sm:$0xff]   ;;  %v1426_v60 = vld [vmem:[#allocation5 + $0x90] ss:$8 sps:$4 sm:$0xff]  }
  0x4b   :  { %756 = vmatprep.subr.bf16.mxu1 %v1373_v21  ;;  %778 = vmatprep.mubr.bf16.mxu1 %v1444_v51  ;;  %v1424_v57 = vld [vmem:[#allocation5 + $0x94] ss:$8 sps:$4 sm:$0xff]   ;;  %v1430_v61 = vld [vmem:[#allocation5 + $0x84] ss:$8 sps:$4 sm:$0xff]   ;;  %v1429_v62 = vld [vmem:[#allocation5 + $0x190] ss:$8 sps:$4 sm:$0xff]  }
  0x4c   :  { %v1427_v59 = vld [vmem:[#allocation5 + $0x194] ss:$8 sps:$4 sm:$0xff]   ;;  %v1433_v63 = vld [vmem:[#allocation5 + $0x184] ss:$8 sps:$4 sm:$0xff]   ;;  %v1432_v0 = vld [vmem:[#allocation5 + $0x80] ss:$8 sps:$4 sm:$0xff]  }
  0x4d   :  { %714 = vmatpush1.bf16.msra.mxu0 %v1372_v22  ;;  %v1441_v1 = vld [vmem:[#allocation5 + $0x274] ss:$8 sps:$4 sm:$0xff]   ;;  %v1438_v2 = vld [vmem:[#allocation5 + $0x180] ss:$8 sps:$4 sm:$0xff]   ;;  %v1439_v4 = vld [vmem:[#allocation5 + $0x270] ss:$8 sps:$4 sm:$0xff]  }
  0x4e   :  { %715 = vmatprep.subr.bf16.mxu0 %v1376_v23  ;;  %757 = vmatpush1.bf16.msra.mxu1 %v1375_v24  ;;  %v1435_v3 = vld [vmem:[#allocation2] ss:$24 sps:$4 sm:$0xff]   ;;  %v1447_v6 = vld [vmem:[#allocation5 + $0x264] ss:$8 sps:$4 sm:$0xff]   ;;  %v1450_v9 = vld [vmem:[#allocation5 + $0x254] ss:$8 sps:$4 sm:$0xff]  }
  0x4f   :  { %758 = vmatprep.subr.bf16.mxu1 %v1379_v25  ;;  %v1442_v5 = vld [vmem:[#allocation2 + $0x8] ss:$24 sps:$4 sm:$0xff]   ;;  %v1445_v7 = vld [vmem:[#allocation5 + $0x260] ss:$8 sps:$4 sm:$0xff]   ;;  %v1492_v8 = vld [vmem:[#allocation2 + $0x14] ss:$24 sps:$4 sm:$0xff]  }
  0x50   :  { %v1448_v10 = vld [vmem:[#allocation5 + $0x250] ss:$8 sps:$4 sm:$0xff]   ;;  %v1453_v11 = vld [vmem:[#allocation5 + $0x244] ss:$8 sps:$4 sm:$0xff]   ;;  %v1451_v12 = vld [vmem:[#allocation5 + $0x240] ss:$8 sps:$4 sm:$0xff]  }
  0x51   :  { %716 = vmatpush1.bf16.msra.mxu0 %v1378_v26  ;;  %v1456_v13 = vld [vmem:[#allocation5 + $0x234] ss:$8 sps:$4 sm:$0xff]   ;;  %v1454_v14 = vld [vmem:[#allocation5 + $0x230] ss:$8 sps:$4 sm:$0xff]   ;;  %v1459_v15 = vld [vmem:[#allocation5 + $0x224] ss:$8 sps:$4 sm:$0xff]  }
  0x52   :  { %717 = vmatprep.subr.bf16.mxu0 %v1382_v27  ;;  %759 = vmatpush1.bf16.msra.mxu1 %v1381_v28  ;;  %v1457_v16 = vld [vmem:[#allocation5 + $0x220] ss:$8 sps:$4 sm:$0xff]   ;;  %v1462_v17 = vld [vmem:[#allocation5 + $0x214] ss:$8 sps:$4 sm:$0xff]   ;;  %v1460_v18 = vld [vmem:[#allocation5 + $0x210] ss:$8 sps:$4 sm:$0xff]  }
  0x53   :  { %760 = vmatprep.subr.bf16.mxu1 %v1385_v29  ;;  %v1465_v19 = vld [vmem:[#allocation5 + $0x204] ss:$8 sps:$4 sm:$0xff]   ;;  %v1463_v20 = vld [vmem:[#allocation5 + $0x200] ss:$8 sps:$4 sm:$0xff]   ;;  %v1468_v21 = vld [vmem:[#allocation5 + $0x2f4] ss:$8 sps:$4 sm:$0xff]  }
  0x54   :  { %v1466_v22 = vld [vmem:[#allocation5 + $0x2f0] ss:$8 sps:$4 sm:$0xff]   ;;  %v1471_v23 = vld [vmem:[#allocation5 + $0x2e4] ss:$8 sps:$4 sm:$0xff]   ;;  %v1469_v24 = vld [vmem:[#allocation5 + $0x2e0] ss:$8 sps:$4 sm:$0xff]  }
  0x55   :  { %718 = vmatpush1.bf16.msra.mxu0 %v1384_v30  ;;  %v1474_v25 = vld [vmem:[#allocation5 + $0x2d4] ss:$8 sps:$4 sm:$0xff]   ;;  %v1472_v26 = vld [vmem:[#allocation5 + $0x2d0] ss:$8 sps:$4 sm:$0xff]   ;;  %v1477_v27 = vld [vmem:[#allocation5 + $0x2c4] ss:$8 sps:$4 sm:$0xff]  }
  0x56   :  { %719 = vmatprep.subr.bf16.mxu0 %v1388_v31  ;;  %761 = vmatpush1.bf16.msra.mxu1 %v1387_v32  ;;  %v1475_v28 = vld [vmem:[#allocation5 + $0x2c0] ss:$8 sps:$4 sm:$0xff]   ;;  %v1480_v29 = vld [vmem:[#allocation5 + $0x2b4] ss:$8 sps:$4 sm:$0xff]   ;;  %v1478_v30 = vld [vmem:[#allocation5 + $0x2b0] ss:$8 sps:$4 sm:$0xff]  }
  0x57   :  { %762 = vmatprep.subr.bf16.mxu1 %v1391_v33  ;;  %v1483_v31 = vld [vmem:[#allocation5 + $0x2a4] ss:$8 sps:$4 sm:$0xff]   ;;  %v1481_v32 = vld [vmem:[#allocation5 + $0x2a0] ss:$8 sps:$4 sm:$0xff]   ;;  %v1486_v33 = vld [vmem:[#allocation5 + $0x294] ss:$8 sps:$4 sm:$0xff]  }
  0x58   :  { %v1502_v47 = vld [vmem:[#allocation7 + $0x18] sm:$0xff]   ;;  %v1506_v51 = vld [vmem:[#allocation7 + $0x8] sm:$0xff]   ;;  %vm1636_vm0 = vmmov 0   ;;  %s1637_s23 = smov [#allocation10]  }
  0x59   :  { %720 = vmatpush2.bf16.msra.mxu0 %v1390_v34  ;;  %v1484_v34 = vld [vmem:[#allocation5 + $0x290] ss:$8 sps:$4 sm:$0xff]   ;;  %s1134_s24 = sshll.u32 %s1637_s23, 4  ;;  %s1135_s24 = int_to_ptr.vmem [resolvable:$true] %s1134_s24 }
  0x5a   :  { %721 = vmatprep.subr.bf16.mxu0 %v1394_v35  ;;  %763 = vmatpush2.bf16.msra.mxu1 %v1393_v36  ;;  %v1489_v35 = vld [vmem:[#allocation5 + $0x284] ss:$8 sps:$4 sm:$0xff]   ;;  %v1487_v36 = vld [vmem:[#allocation5 + $0x280] ss:$8 sps:$4 sm:$0xff]   ;;  %s1597_s25 = scalar_lea.vmem %s1135_s24, 256  ;;  %p1602_p7 = scmp.lt.s32.totalorder %s1135_s24, %s1135_s24 }
  0x5b   :  { %764 = vmatprep.subr.bf16.mxu1 %v1397_v37  ;;  %v1490_v37 = vld [vmem:[#allocation2 + $0x10] ss:$24 sps:$4 sm:$0xff]   ;;  %p1598_p6 = scmp.ne.s32.totalorder %s1135_s24, %s1597_s25  ;;  %p1603_p8 = scmp.lt.s32.totalorder %s1597_s25, %s1597_s25 }
  0x5d   :  { %722 = vmatpush2.bf16.msra.mxu0 %v1396_v38  ;;  %v1493_v38 = vld [vmem:[#allocation7 + $0x78] sm:$0xff]   ;;  %p1604_p9 = por %p1603_p8, %p1602_p7 }
  0x5e   :  { %723 = vmatprep.subr.bf16.mxu0 %v1400_v39  ;;  %765 = vmatpush2.bf16.msra.mxu1 %v1399_v40  ;;  %v1494_v39 = vld [vmem:[#allocation7 + $0x38] sm:$0xff]   ;;  %v1495_v40 = vld [vmem:[#allocation7 + $0x70] sm:$0xff]  }
  0x5f   :  { %766 = vmatprep.subr.bf16.mxu1 %v1403_v41  ;;  %v1496_v41 = vld [vmem:[#allocation7 + $0x30] sm:$0xff]   ;;  %p1605_p10 = pnand %p1604_p9, %p1598_p6 }
  0x61   :  { %724 = vmatpush2.bf16.msra.mxu0 %v1402_v42  ;;  %v1497_v42 = vld [vmem:[#allocation7 + $0x68] sm:$0xff]  }
  0x62   :  { %725 = vmatprep.subr.bf16.mxu0 %v1406_v43  ;;  %767 = vmatpush2.bf16.msra.mxu1 %v1405_v44  ;;  %v1498_v43 = vld [vmem:[#allocation7 + $0x28] sm:$0xff]   ;;  %v1499_v44 = vld [vmem:[#allocation7 + $0x60] sm:$0xff]  }
  0x63   :  { %768 = vmatprep.subr.bf16.mxu1 %v1409_v45  ;;  %v1500_v45 = vld [vmem:[#allocation7 + $0x20] sm:$0xff]  }
  0x65   :  { %726 = vmatpush2.bf16.msra.mxu0 %v1408_v46  ;;  %v1501_v46 = vld [vmem:[#allocation7 + $0x58] sm:$0xff]  }
  0x66   :  { %727 = vmatprep.subr.bf16.mxu0 %v1412_v48  ;;  %769 = vmatpush2.bf16.msra.mxu1 %v1411_v49  ;;  %v1503_v48 = vld [vmem:[#allocation7 + $0x50] sm:$0xff]  }
  0x67   :  { %770 = vmatprep.subr.bf16.mxu1 %v1415_v50  ;;  %v1504_v49 = vld [vmem:[#allocation7 + $0x10] sm:$0xff]   ;;  %v1505_v50 = vld [vmem:[#allocation7 + $0x48] sm:$0xff]  }
  0x69   :  { %728 = vmatpush2.bf16.msra.mxu0 %v1414_v52  ;;  %v1507_v52 = vld [vmem:[#allocation7 + $0x40] sm:$0xff]  }
  0x6a   :  { %729 = vmatprep.subr.bf16.mxu0 %v1418_v53  ;;  %771 = vmatpush2.bf16.msra.mxu1 %v1417_v54  ;;  %v1508_v53 = vld [vmem:[#allocation7] sm:$0xff]   ;;  %v1635_v54 = vmov 0.0  }
  0x6b   :  { %772 = vmatprep.subr.bf16.mxu1 %v1421_v55  ;;  %v183_v55 = vlaneseq }
  0x6d   :  { %730 = vmatpush2.bf16.msra.mxu0 %v1420_v56 }
  0x6e   :  { %731 = vmatprep.subr.bf16.mxu0 %v1424_v57  ;;  %773 = vmatpush2.bf16.msra.mxu1 %v1423_v58  ;;  %v184_v57 = vshrl.u32 %v183_v55, 7 }
  0x6f   :  { %774 = vmatprep.subr.bf16.mxu1 %v1427_v59 }
  0x71   :  { %732 = vmatpush2.bf16.msra.mxu0 %v1426_v60  ;;  %v189_v60 = vsub.s32 1, %v184_v57 }
  0x72   :  { %733 = vmatprep.subr.bf16.mxu0 %v1430_v61  ;;  %775 = vmatpush2.bf16.msra.mxu1 %v1429_v62  ;;  %v77_v61 = vld [vmem:[%s1711_s4] sm:$0x3]  ;;  %v185_v62 = vsub.s32 0, %v184_v57 }
  0x73   :  { %776 = vmatprep.subr.bf16.mxu1 %v1433_v63 }
  0x75   :  { %734 = vmatpush2.bf16.msra.mxu0 %v1432_v0 }
  0x76   :  { %789 = vmatprep.subr.bf16.mxu0 %v1441_v1  ;;  %777 = vmatpush2.bf16.msra.mxu1 %v1438_v2  ;;  %v190_v1 = vrot.slane %v77_v61, %v189_v60  ;;  %v186_v2 = vrot.slane %v77_v61, %v185_v62 }
  0x77   :  { %1276 = vmatprep.subr.bf16.mxu1 %v1493_v38 }
  0x78   :  { %736 = vmatmul.mubr.bf16.vlgmr.msra.gmra.mxu0 %v1435_v3 }
  0x79   :  { %790 = vmatpush1.bf16.msra.mxu0 %v1439_v4  ;;  %779 = vmatmul.mubr.bf16.vlgmr.msra.gmra.mxu1 %v1442_v5 }
  0x7a   :  { %791 = vmatprep.subr.bf16.mxu0 %v1447_v6  ;;  %821 = vmatprep.mubr.bf16.mxu0 %v1492_v8 }
  0x7b   :  { %1277 = vmatpush3.bf16.msra.mxu1 %v1494_v39  ;;  %v1250_v39 = vld [vmem:[%s1711_s4 + $0x2] ss:$0 sm:$0xff] }
  0x7c   :  { %1278 = vmatprep.subr.bf16.mxu1 %v1495_v40 }
  0x7d   :  { %792 = vmatpush1.bf16.msra.mxu0 %v1445_v7 }
  0x7e   :  { %793 = vmatprep.subr.bf16.mxu0 %v1450_v9 }
  0x7f   :  { %1279 = vmatpush3.bf16.msra.mxu1 %v1496_v41 }
  0x80   :  { %1280 = vmatprep.subr.bf16.mxu1 %v1497_v42 }
  0x81   :  { %794 = vmatpush1.bf16.msra.mxu0 %v1448_v10 }
  0x82   :  { %795 = vmatprep.subr.bf16.mxu0 %v1453_v11 }
  0x83   :  { %1281 = vmatpush3.bf16.msra.mxu1 %v1498_v43 }
  0x84   :  { %1282 = vmatprep.subr.bf16.mxu1 %v1499_v44 }
  0x85   :  { %796 = vmatpush1.bf16.msra.mxu0 %v1451_v12 }
  0x86   :  { %797 = vmatprep.subr.bf16.mxu0 %v1456_v13 }
  0x87   :  { %1283 = vmatpush3.bf16.msra.mxu1 %v1500_v45 }
  0x88   :  { %1284 = vmatprep.subr.bf16.mxu1 %v1501_v46 }
  0x89   :  { %798 = vmatpush1.bf16.msra.mxu0 %v1454_v14 }
  0x8a   :  { %799 = vmatprep.subr.bf16.mxu0 %v1459_v15 }
  0x8b   :  { %1285 = vmatpush3.bf16.msra.mxu1 %v1502_v47 }
  0x8c   :  { %1286 = vmatprep.subr.bf16.mxu1 %v1503_v48  ;;  %v1267_v48 = vld [vmem:[%s1711_s4 + $0x3] ss:$0 sm:$0xff] }
  0x8d   :  { %800 = vmatpush1.bf16.msra.mxu0 %v1457_v16 }
  0x8e   :  { %801 = vmatprep.subr.bf16.mxu0 %v1462_v17 }
  0x8f   :  { %1287 = vmatpush3.bf16.msra.mxu1 %v1504_v49 }
  0x90   :  { %1288 = vmatprep.subr.bf16.mxu1 %v1505_v50 }
  0x91   :  { %802 = vmatpush1.bf16.msra.mxu0 %v1460_v18 }
  0x92   :  { %803 = vmatprep.subr.bf16.mxu0 %v1465_v19 }
  0x93   :  { %1289 = vmatpush3.bf16.msra.mxu1 %v1506_v51 }
  0x94   :  { %1290 = vmatprep.subr.bf16.mxu1 %v1507_v52 }
  0x95   :  { %804 = vmatpush1.bf16.msra.mxu0 %v1463_v20 }
  0x96   :  { %805 = vmatprep.subr.bf16.mxu0 %v1468_v21 }
  0x97   :  { %1291 = vmatpush3.bf16.msra.mxu1 %v1508_v53 }
  0x98   :  { %1307 = vmatprep.subr.bf16.mxu1 %v1635_v54 }
  0x99   :  { %806 = vmatpush2.bf16.msra.mxu0 %v1466_v22 }
  0x9a   :  { %807 = vmatprep.subr.bf16.mxu0 %v1471_v23 }
  0x9d   :  { %808 = vmatpush2.bf16.msra.mxu0 %v1469_v24 }
  0x9e   :  { %809 = vmatprep.subr.bf16.mxu0 %v1474_v25 }
  0xa1   :  { %810 = vmatpush2.bf16.msra.mxu0 %v1472_v26 }
  0xa2   :  { %811 = vmatprep.subr.bf16.mxu0 %v1477_v27  ;;  %v1509_v27 = vld [vmem:[#allocation8 + $0x38] sm:$0xff]  }
  0xa5   :  { %812 = vmatpush2.bf16.msra.mxu0 %v1475_v28 }
  0xa6   :  { %813 = vmatprep.subr.bf16.mxu0 %v1480_v29  ;;  %v1510_v29 = vld [vmem:[#allocation8 + $0x30] sm:$0xff]  }
  0xa9   :  { %814 = vmatpush2.bf16.msra.mxu0 %v1478_v30  ;;  %v1511_v30 = vld [vmem:[#allocation8 + $0x28] sm:$0xff]  }
  0xaa   :  { %815 = vmatprep.subr.bf16.mxu0 %v1483_v31  ;;  %v1512_v31 = vld [vmem:[#allocation8 + $0x20] sm:$0xff]  }
  0xad   :  { %816 = vmatpush2.bf16.msra.mxu0 %v1481_v32  ;;  %v1513_v32 = vld [vmem:[#allocation8 + $0x18] sm:$0xff]  }
  0xae   :  { %817 = vmatprep.subr.bf16.mxu0 %v1486_v33  ;;  %v1514_v33 = vld [vmem:[#allocation8 + $0x10] sm:$0xff]  }
  0xb1   :  { %818 = vmatpush2.bf16.msra.mxu0 %v1484_v34  ;;  %v1515_v34 = vld [vmem:[#allocation8 + $0x8] sm:$0xff]  }
  0xb2   :  { %819 = vmatprep.subr.bf16.mxu0 %v1489_v35  ;;  %v1516_v35 = vld [vmem:[#allocation8] sm:$0xff]  }
  0xb5   :  { %820 = vmatpush2.bf16.msra.mxu0 %v1487_v36 }
  0xb8   :  { %822 = vmatmul.mubr.bf16.vlgmr.msra.gmra.mxu0 %v1490_v37 }
 0x138   :  { %v737_v56 = vpop.f32.mrf.mxu0 }
 0x139   :  { %v780_v59 = vpop.f32.mrf.mxu1  ;;  %v738_v7 = vadd.f32 %v737_v56, %v186_v2 }
 0x13a   :  { %v739_v58 = vpop.f32.mrf.mxu0 }
 0x13b   :  { %v782_v0 = vpop.f32.mrf.mxu1  ;;  %v740_v5 = vadd.f32 %v739_v58, %v190_v1  ;;  %v781_v14 = vadd.f32 %v780_v59, %v738_v7 }
 0x13c   :  { %v741_v63 = vpop.f32.mrf.mxu0 }
 0x13d   :  { %v784_v4 = vpop.f32.mrf.mxu1  ;;  %v742_v6 = vadd.f32 %v741_v63, %v186_v2  ;;  %v783_v12 = vadd.f32 %v782_v0, %v740_v5 }
 0x13e   :  { %v743_v3 = vpop.f32.mrf.mxu0 }
 0x13f   :  { %v744_v9 = vadd.f32 %v743_v3, %v190_v1  ;;  %v786_v10 = vpop.f32.mrf.mxu1  ;;  %v785_v13 = vadd.f32 %v784_v4, %v742_v6 }
 0x141   :  { %v787_v16 = vadd.f32 %v786_v10, %v744_v9 }
 0x178   :  { %v823_v8 = vpop.f32.mrf.mxu0 }
 0x179   :  { %v824_v19 = vadd.f32 %v823_v8, %v781_v14 }
 0x17a   :  { %v825_v11 = vpop.f32.mrf.mxu0 }
 0x17b   :  { %v826_v17 = vadd.f32 %v825_v11, %v783_v12  ;;  %v832_v25 = vmax.f32 %v824_v19, 0.0 }
 0x17c   :  { %v827_v15 = vpop.f32.mrf.mxu0 }
 0x17d   :  { %v828_v18 = vadd.f32 %v827_v15, %v785_v13  ;;  %v833_v23 = vmax.f32 %v826_v17, 0.0 }
 0x17e   :  { %v829_v20 = vpop.f32.mrf.mxu0 }
 0x17f   :  { %v830_v21 = vadd.f32 %v829_v20, %v787_v16  ;;  %v834_v22 = vmax.f32 %v828_v18, 0.0 }
 0x181   :  { %v835_v24 = vmax.f32 %v830_v21, 0.0  ;;  %v836_v28 = vpack.c.bf16 %v834_v22, %v832_v25 }
 0x183   :  { %v837_v26 = vpack.c.bf16 %v835_v24, %v833_v23 }
 0x185   :  { %1004 = vmatprep.mubr.bf16.mxu1 %v837_v26 }
 0x186   :  { %1005 = vmatmul.mubr.bf16.vlgmr.msra.gmra.mxu1 %v836_v28 }
 0x187   :  { %1308 = vmatpush3.bf16.msra.mxu1 %v1509_v27  ;;  %1323 = vmatprep.mubr.msk.bf16.mxu1 %vm1636_vm0, %v1635_v54 }
 0x188   :  { %1309 = vmatprep.subr.bf16.mxu1 %v1635_v54 }
 0x18b   :  { %1310 = vmatpush3.bf16.msra.mxu1 %v1510_v29 }
 0x18c   :  { %1311 = vmatprep.subr.bf16.mxu1 %v1635_v54 }
 0x18f   :  { %1312 = vmatpush3.bf16.msra.mxu1 %v1511_v30 }
 0x190   :  { %1313 = vmatprep.subr.bf16.mxu1 %v1635_v54 }
 0x193   :  { %1314 = vmatpush3.bf16.msra.mxu1 %v1512_v31 }
 0x194   :  { %1315 = vmatprep.subr.bf16.mxu1 %v1635_v54 }
 0x197   :  { %1316 = vmatpush3.bf16.msra.mxu1 %v1513_v32 }
 0x198   :  { %1317 = vmatprep.subr.bf16.mxu1 %v1635_v54 }
 0x19b   :  { %1318 = vmatpush3.bf16.msra.mxu1 %v1514_v33 }
 0x19c   :  { %1319 = vmatprep.subr.bf16.mxu1 %v1635_v54 }
 0x19f   :  { %1320 = vmatpush3.bf16.msra.mxu1 %v1515_v34 }
 0x1a0   :  { %1321 = vmatprep.subr.bf16.mxu1 %v1635_v54 }
 0x1a3   :  { %1322 = vmatpush3.bf16.msra.mxu1 %v1516_v35 }
 0x246   :  { %v1292_v36 = vpop.f32.mrf.mxu1 }
 0x248   :  { %v1293_v37 = vpop.f32.mrf.mxu1 }
 0x249   :  { %v1294_v38 = vadd.f32 %v1293_v37, %v1292_v36 }
 0x24a   :  { %v1295_v40 = vpop.f32.mrf.mxu1 }
 0x24b   :  { %v1007_v42 = vadd.f32 %v1294_v38, %v1250_v39 }
 0x24c   :  { %v1296_v41 = vpop.f32.mrf.mxu1 }
 0x24d   :  { %v1297_v43 = vadd.f32 %v1296_v41, %v1295_v40  ;;  %v1013_v45 = vmax.f32 %v1007_v42, 0.0 }
 0x24f   :  { %v1010_v44 = vadd.f32 %v1297_v43, %v1250_v39 }
 0x251   :  { %v1014_v46 = vmax.f32 %v1010_v44, 0.0 }
 0x253   :  { %v1015_v47 = vpack.c.bf16 %v1014_v46, %v1013_v45 }
 0x255   :  { %1324 = vmatmul.mubr.bf16.vlgmr.msra.gmra.mxu1 %v1015_v47 }
 0x315   :  { %v1120_v49 = vpop.f32.mrf.mxu1 }
 0x316   :  { %v1121_v50 = vadd.f32 %v1267_v48, %v1120_v49 }
 0x317   :  { %v1325_v51 = vpop.f32.mrf.mxu1 }
 0x318   :  { %1127 = vst [vmem:[#allocation10] sm:$0xff] %v1121_v50 }
 0x319   :  { %v1123_v52 = vpop.f32.mrf.mxu1 }
 0x31a   :  { %v1124_v53 = vadd.f32 %v1267_v48, %v1123_v52 }
 0x31b   :  { %v1326_v54 = vpop.f32.mrf.mxu1 }
 0x31c   :  { %1128 = vst [vmem:[#allocation10 + $0x8] sm:$0xff] %v1124_v53 }
 0x31d   :  { %1608 = shalt.err (!%p1605_p10)
}
 0x31e   :  { %1140 = dma.vmem_to_hbm [thread:$0]  %s1135_s24, 256, %s1712_s5, [#allocation4], %s1626_s21, %s1626_s21, %s1627_s22  }
 0x31f   :  { %1623 = dma.done.wait [#allocation4], 256  }
 0x320   :  { %1624 = vsyncadd [#allocation4], 4294967040 }
 0x321   :  { %1144 = vsyncpa [#allocation3], 1 }
 0x322   :  { %1145 = vsyncpa [#allocation6], 1 }
 0x323   :  { %1146 = vsyncpa [#allocation9], 1 }
 0x324   :  { %1147 = vsyncpa [#allocation4], 1 }

</bundles_post_ra>
